<compile_context>
chip_gen: v5e
topology: v5e:2x2
jax: 0.10.0
libtpu: 0.0.40
codegen_flags: <defaults>
</compile_context>

<pallas_src>
import jax
import jax.numpy as jnp
from jax.experimental import pallas as pl
from jax.experimental.pallas import tpu as pltpu

_LANE = 128
_SUBLANE = 16  # 16 rows keeps bf16 sublane packing tile-aligned


def _round_up(n: int, m: int) -> int:
    return ((n + m - 1) // m) * m


def dqn_kernel(x_ref, w1_ref, b1_ref, w2_ref, b2_ref, w3_ref, b3_ref, o_ref):
    """One batch tile: three MXU matmuls (bf16 operands, f32 accumulate) plus
    f32 bias adds / ReLUs on the VPU. Weights/biases are VMEM-resident."""
    x = x_ref[...]
    h1 = jnp.dot(x, w1_ref[...], preferred_element_type=jnp.float32) + b1_ref[...]
    h1 = jnp.maximum(h1, 0.0).astype(w2_ref.dtype)          # cast only at MXU input
    h2 = jnp.dot(h1, w2_ref[...], preferred_element_type=jnp.float32) + b2_ref[...]
    h2 = jnp.maximum(h2, 0.0).astype(w3_ref.dtype)
    out = jnp.dot(h2, w3_ref[...], preferred_element_type=jnp.float32) + b3_ref[...]
    o_ref[...] = out.astype(o_ref.dtype)                     # lane-dense (tb, 128) store


def dqn_forward(x, params, *, block_batch=512, compute_dtype=jnp.bfloat16):
    """x: (batch, input_size) f32. params: w1,b1,w2,b2,w3,b3 with weights (in, out)."""
    w1, b1 = params["w1"], params["b1"]
    w2, b2 = params["w2"], params["b2"]
    w3, b3 = params["w3"], params["b3"]
    batch, in_size = x.shape
    out_size = w3.shape[1]

    # --- Lane-pad the last layer so the output block is a full 128-lane vreg. ---
    out_pad = _round_up(max(out_size, _LANE), _LANE)
    w3p = jnp.zeros((w3.shape[0], out_pad), w3.dtype).at[:, :out_size].set(w3)
    b3p = jnp.zeros((1, out_pad), b3.dtype).at[:, :out_size].set(b3)

    # --- Batch tiling: sublane-aligned tiles, zero-pad ragged rows. ---
    tb = min(block_batch, _round_up(batch, _SUBLANE))
    batch_pad = _round_up(batch, tb)
    xp = x
    if batch_pad != batch:
        xp = jnp.zeros((batch_pad, in_size), x.dtype).at[:batch, :].set(x)

    # --- bf16 MXU operands, f32 biases / accumulation. ---
    xp = xp.astype(compute_dtype)
    w1c, w2c, w3c = (w.astype(compute_dtype) for w in (w1, w2, w3p))
    b1f, b2f, b3f = (b.astype(jnp.float32) for b in (b1, b2, b3p))

    grid = (pl.cdiv(batch_pad, tb),)
    resident = lambda shape: pl.BlockSpec(shape, lambda i: (0, 0))  # stays in VMEM

    out_padded = pl.pallas_call(
        dqn_kernel,
        out_shape=jax.ShapeDtypeStruct((batch_pad, out_pad), jnp.float32),
        grid=grid,
        in_specs=[
            pl.BlockSpec((tb, in_size), lambda i: (i, 0)),   # streamed activation tile
            resident(w1c.shape), resident(b1f.shape),
            resident(w2c.shape), resident(b2f.shape),
            resident(w3c.shape), resident(b3f.shape),
        ],
        out_specs=pl.BlockSpec((tb, out_pad), lambda i: (i, 0)),
        compiler_params=pltpu.CompilerParams(
            dimension_semantics=("parallel",)),               # use both v7x TCs
    )(xp, w1c, b1f, w2c, b2f, w3c, b3f)

    return out_padded[:batch, :out_size]


def init_dqn_params(key, input_size, output_size):
    """Deterministic init mimicking PyTorch Linear's U(-1/sqrt(fan_in), 1/sqrt(fan_in)).
    Weights are returned already transposed to (in_features, out_features)."""
    dims = [(input_size, 128), (128, 64), (64, output_size)]
    params = {}
    for i, (fan_in, fan_out) in enumerate(dims, start=1):
        key, kw, kb = jax.random.split(key, 3)
        bound = 1.0 / jnp.sqrt(jnp.float32(fan_in))
        params[f"w{i}"] = jax.random.uniform(
            kw, (fan_in, fan_out), jnp.float32, -bound, bound)
        params[f"b{i}"] = jax.random.uniform(
            kb, (1, fan_out), jnp.float32, -bound, bound)
    return params


def dqn_reference_f32(x, params):
    """Pure-f32 JAX reference (original module semantics)."""
    h1 = jnp.maximum(x @ params["w1"] + params["b1"], 0.0)
    h2 = jnp.maximum(h1 @ params["w2"] + params["b2"], 0.0)
    return h2 @ params["w3"] + params["b3"]


def dqn_reference_bf16(x, params, compute_dtype=jnp.bfloat16):
    """Reference that mirrors the kernel's numerics: bf16 MXU operands, f32 accum/ReLU."""
    f32 = jnp.float32
    h1 = jnp.maximum(
        jnp.dot(x.astype(compute_dtype), params["w1"].astype(compute_dtype),
                preferred_element_type=f32) + params["b1"], 0.0)
    h2 = jnp.maximum(
        jnp.dot(h1.astype(compute_dtype), params["w2"].astype(compute_dtype),
                preferred_element_type=f32) + params["b2"], 0.0)
    return jnp.dot(h2.astype(compute_dtype), params["w3"].astype(compute_dtype),
                   preferred_element_type=f32) + params["b3"]


if __name__ == "__main__":
    key = jax.random.PRNGKey(0)
    input_size = 8    # e.g. two-link arm state vector
    output_size = 4   # e.g. discrete action values

    key, kx, kp = jax.random.split(key, 3)
    params = init_dqn_params(kp, input_size, output_size)

    # Tiny "acting" batch (batch=2): padded to one sublane-aligned tile.
    x_small = jax.random.normal(kx, (2, input_size), jnp.float32)
    out_small = jax.block_until_ready(dqn_forward(x_small, params))
    assert out_small.shape == (2, output_size)
    assert jnp.allclose(out_small, dqn_reference_bf16(x_small, params),
                        atol=1e-4, rtol=1e-4), "mismatch vs bf16-matched reference"
    assert jnp.allclose(out_small, dqn_reference_f32(x_small, params),
                        atol=3e-2, rtol=3e-2), "mismatch vs f32 reference"

    # Replay-buffer-sized batch: exercises the batch grid (2 tiles of 256, padded).
    key, kx2 = jax.random.split(key)
    x_big = jax.random.normal(kx2, (300, input_size), jnp.float32)
    out_big = jax.block_until_ready(dqn_forward(x_big, params, block_batch=256))
    assert out_big.shape == (300, output_size)
    assert jnp.allclose(out_big, dqn_reference_bf16(x_big, params),
                        atol=1e-4, rtol=1e-4), "mismatch vs bf16-matched reference (gridded)"

    print("KERNEL_OK")
</pallas_src>

<mosaic_0001>
module attributes {stable_mosaic.version = 11 : i64} {
  func.func @dqn_kernel(%arg0: i32, %arg1: memref<16x8xbf16, #tpu.memory_space<vmem>>, %arg2: memref<8x128xbf16, #tpu.memory_space<vmem>>, %arg3: memref<1x128xf32, #tpu.memory_space<vmem>>, %arg4: memref<128x64xbf16, #tpu.memory_space<vmem>>, %arg5: memref<1x64xf32, #tpu.memory_space<vmem>>, %arg6: memref<64x128xbf16, #tpu.memory_space<vmem>>, %arg7: memref<1x128xf32, #tpu.memory_space<vmem>>, %arg8: memref<16x128xf32, #tpu.memory_space<vmem>>) attributes {dimension_semantics = [#tpu.dimension_semantics<parallel>], iteration_bounds = array<i64: 1>, scalar_prefetch = 0 : i64, scratch_operands = 0 : i64, tpu.core_type = #tpu.core_type<tc>, window_params = [{transform_indices = @transform_0, window_bounds = array<i64: 16, 8>}, {pipeline_mode = #tpu.pipeline_mode<synchronous>, transform_indices = @transform_1, window_bounds = array<i64: 8, 128>}, {pipeline_mode = #tpu.pipeline_mode<synchronous>, transform_indices = @transform_2, window_bounds = array<i64: 1, 128>}, {pipeline_mode = #tpu.pipeline_mode<synchronous>, transform_indices = @transform_3, window_bounds = array<i64: 128, 64>}, {pipeline_mode = #tpu.pipeline_mode<synchronous>, transform_indices = @transform_4, window_bounds = array<i64: 1, 64>}, {pipeline_mode = #tpu.pipeline_mode<synchronous>, transform_indices = @transform_5, window_bounds = array<i64: 64, 128>}, {pipeline_mode = #tpu.pipeline_mode<synchronous>, transform_indices = @transform_6, window_bounds = array<i64: 1, 128>}, {transform_indices = @transform_7, window_bounds = array<i64: 16, 128>}]} {
    %c0 = arith.constant 0 : index
    %c0_0 = arith.constant 0 : index
    %0 = vector.load %arg1[%c0, %c0_0] : memref<16x8xbf16, #tpu.memory_space<vmem>>, vector<16x8xbf16>
    %c0_1 = arith.constant 0 : index
    %c0_2 = arith.constant 0 : index
    %1 = vector.load %arg2[%c0_1, %c0_2] : memref<8x128xbf16, #tpu.memory_space<vmem>>, vector<8x128xbf16>
    %cst = arith.constant dense<0.000000e+00> : vector<16x128xf32>
    %2 = tpu.matmul %0, %1, %cst {dimension_numbers = #tpu.dot_dimension_numbers<[1], [0], [0], [1], [0, 0, 1, 1], [], []>} : vector<16x8xbf16>, vector<8x128xbf16>, vector<16x128xf32> -> vector<16x128xf32>
    %c0_3 = arith.constant 0 : index
    %c0_4 = arith.constant 0 : index
    %3 = vector.load %arg3[%c0_3, %c0_4] : memref<1x128xf32, #tpu.memory_space<vmem>>, vector<1x128xf32>
    %4 = vector.broadcast %3 : vector<1x128xf32> to vector<16x128xf32>
    %5 = arith.addf %2, %4 : vector<16x128xf32>
    %cst_5 = arith.constant 0.000000e+00 : f32
    %6 = vector.broadcast %cst_5 : f32 to vector<16x128xf32>
    %7 = arith.maximumf %5, %6 : vector<16x128xf32>
    %8 = arith.truncf %7 : vector<16x128xf32> to vector<16x128xbf16>
    %c0_6 = arith.constant 0 : index
    %c0_7 = arith.constant 0 : index
    %9 = vector.load %arg4[%c0_6, %c0_7] : memref<128x64xbf16, #tpu.memory_space<vmem>>, vector<128x64xbf16>
    %cst_8 = arith.constant dense<0.000000e+00> : vector<16x64xf32>
    %10 = tpu.matmul %8, %9, %cst_8 {dimension_numbers = #tpu.dot_dimension_numbers<[1], [0], [0], [1], [0, 0, 1, 1], [], []>} : vector<16x128xbf16>, vector<128x64xbf16>, vector<16x64xf32> -> vector<16x64xf32>
    %c0_9 = arith.constant 0 : index
    %c0_10 = arith.constant 0 : index
    %11 = vector.load %arg5[%c0_9, %c0_10] : memref<1x64xf32, #tpu.memory_space<vmem>>, vector<1x64xf32>
    %12 = vector.broadcast %11 : vector<1x64xf32> to vector<16x64xf32>
    %13 = arith.addf %10, %12 : vector<16x64xf32>
    %cst_11 = arith.constant 0.000000e+00 : f32
    %14 = vector.broadcast %cst_11 : f32 to vector<16x64xf32>
    %15 = arith.maximumf %13, %14 : vector<16x64xf32>
    %16 = arith.truncf %15 : vector<16x64xf32> to vector<16x64xbf16>
    %c0_12 = arith.constant 0 : index
    %c0_13 = arith.constant 0 : index
    %17 = vector.load %arg6[%c0_12, %c0_13] : memref<64x128xbf16, #tpu.memory_space<vmem>>, vector<64x128xbf16>
    %cst_14 = arith.constant dense<0.000000e+00> : vector<16x128xf32>
    %18 = tpu.matmul %16, %17, %cst_14 {dimension_numbers = #tpu.dot_dimension_numbers<[1], [0], [0], [1], [0, 0, 1, 1], [], []>} : vector<16x64xbf16>, vector<64x128xbf16>, vector<16x128xf32> -> vector<16x128xf32>
    %c0_15 = arith.constant 0 : index
    %c0_16 = arith.constant 0 : index
    %19 = vector.load %arg7[%c0_15, %c0_16] : memref<1x128xf32, #tpu.memory_space<vmem>>, vector<1x128xf32>
    %20 = vector.broadcast %19 : vector<1x128xf32> to vector<16x128xf32>
    %21 = arith.addf %18, %20 : vector<16x128xf32>
    %c0_17 = arith.constant 0 : index
    %c0_18 = arith.constant 0 : index
    %22 = vector.load %arg8[%c0_17, %c0_18] : memref<16x128xf32, #tpu.memory_space<vmem>>, vector<16x128xf32>
    tpu.vector_store %arg8[%c0_17, %c0_18], %21 {strides = array<i32>} : memref<16x128xf32, #tpu.memory_space<vmem>>, vector<16x128xf32>,
    return
  }
  func.func @transform_0(%arg0: i32) -> (i32, i32) {
    %c0_i32 = arith.constant 0 : i32
    %c0_i32_0 = arith.constant 0 : i32
    return %arg0, %c0_i32 : i32, i32
  }
  func.func @transform_1(%arg0: i32) -> (i32, i32) {
    %c0_i32 = arith.constant 0 : i32
    %c0_i32_0 = arith.constant 0 : i32
    %c0_i32_1 = arith.constant 0 : i32
    return %c0_i32, %c0_i32_0 : i32, i32
  }
  func.func @transform_2(%arg0: i32) -> (i32, i32) {
    %c0_i32 = arith.constant 0 : i32
    %c0_i32_0 = arith.constant 0 : i32
    %c0_i32_1 = arith.constant 0 : i32
    return %c0_i32, %c0_i32_0 : i32, i32
  }
  func.func @transform_3(%arg0: i32) -> (i32, i32) {
    %c0_i32 = arith.constant 0 : i32
    %c0_i32_0 = arith.constant 0 : i32
    %c0_i32_1 = arith.constant 0 : i32
    return %c0_i32, %c0_i32_0 : i32, i32
  }
  func.func @transform_4(%arg0: i32) -> (i32, i32) {
    %c0_i32 = arith.constant 0 : i32
    %c0_i32_0 = arith.constant 0 : i32
    %c0_i32_1 = arith.constant 0 : i32
    return %c0_i32, %c0_i32_0 : i32, i32
  }
  func.func @transform_5(%arg0: i32) -> (i32, i32) {
    %c0_i32 = arith.constant 0 : i32
    %c0_i32_0 = arith.constant 0 : i32
    %c0_i32_1 = arith.constant 0 : i32
    return %c0_i32, %c0_i32_0 : i32, i32
  }
  func.func @transform_6(%arg0: i32) -> (i32, i32) {
    %c0_i32 = arith.constant 0 : i32
    %c0_i32_0 = arith.constant 0 : i32
    %c0_i32_1 = arith.constant 0 : i32
    return %c0_i32, %c0_i32_0 : i32, i32
  }
  func.func @transform_7(%arg0: i32) -> (i32, i32) {
    %c0_i32 = arith.constant 0 : i32
    %c0_i32_0 = arith.constant 0 : i32
    return %arg0, %c0_i32 : i32, i32
  }
}

</mosaic_0001>

<bundles_post_ra>
// kernel: tpu_custom_call.1
= control target key start
LH: loop header
LB: loop body
LE: loop exit
PB: predicated region body
PF: predicated region fallthrough
CT: control target
= control target key end

     0   :  { %vm44_vm0 = vcmask 1043456   ;;  %vm40_vm1 = vcmask 64512   ;;  %s420_s0 = inlined_call_operand.vmem [shape: bf16[16,8], index: 0, kind: input, shape index: {}]   ;;  %s421_s1 = inlined_call_operand.vmem [shape: bf16[8,128], index: 1, kind: input, shape index: {}]   ;;  %s422_s2 = inlined_call_operand.vmem [shape: f32[1,128], index: 2, kind: input, shape index: {}]   ;;  %s423_s3 = inlined_call_operand.vmem [shape: bf16[128,64], index: 3, kind: input, shape index: {}]   ;;  %s424_s4 = inlined_call_operand.vmem [shape: f32[1,64], index: 4, kind: input, shape index: {}]   ;;  %s425_s5 = inlined_call_operand.vmem [shape: bf16[64,128], index: 5, kind: input, shape index: {}]   ;;  %s426_s6 = inlined_call_operand.vmem [shape: f32[1,128], index: 6, kind: input, shape index: {}]   ;;  %s427_s7 = inlined_call_operand.hbm [shape: f32[16,128], index: 7, kind: output, shape index: {}]  }
   0x1   :  { %v30_v0 = vld [vmem:[%s421_s1] sm:$0xf]  ;;  %v286_v1 = vld [vmem:[%s423_s3 + $0x38] sm:$0xff]  ;;  %v285_v4 = vld [vmem:[%s423_s3 + $0x30] sm:$0xff] }
   0x2   :  { %v46_v2 = vsel %vm44_vm0, %v30_v0, 0  ;;  %v278_v3 = vld [vmem:[%s420_s0] sm:$0xff]  ;;  %133 = vmatpush.bf16.msra.mxu1 %v286_v1 }
   0x3   :  { %55 = vmatpush.bf16.msra.mxu0 %v46_v2 }
   0x4   :  { %12 = vsyncpa [#allocation3], 0  ;;  %v284_v5 = vld [vmem:[%s423_s3 + $0x28] sm:$0xff]  ;;  %v283_v6 = vld [vmem:[%s423_s3 + $0x20] sm:$0xff]  ;;  %vm186_vm2 = vcmask 523264   ;;  %s324_s10 = smov 128  }
   0x5   :  { %v282_v7 = vld [vmem:[%s423_s3 + $0x18] sm:$0xff]  ;;  %v281_v8 = vld [vmem:[%s423_s3 + $0x10] sm:$0xff]  ;;  %v280_v9 = vld [vmem:[%s423_s3 + $0x8] sm:$0xff]  ;;  %s325_s11 = smov 8  }
   0x6   :  { %228 = vmatmul.msk.bf16.vlgmr.msra.gmra.mxu0 %vm40_vm1, %v278_v3  ;;  %134 = vmatpush.bf16.msra.mxu1 %v285_v4  ;;  %v279_v10 = vld [vmem:[%s423_s3] sm:$0xff]  ;;  %v290_v19 = vld [vmem:[%s425_s5 + $0x18] sm:$0xff]  ;;  %v289_v20 = vld [vmem:[%s425_s5 + $0x10] sm:$0xff] }
   0x7   :  { %v294_v12 = vld [vmem:[%s422_s2] ss:$0 sm:$0xff]  ;;  %194 = vmatpush.bf16.msra.mxu2 %v290_v19  ;;  %v288_v21 = vld [vmem:[%s425_s5 + $0x8] sm:$0xff] }
   0x8   :  { %v287_v22 = vld [vmem:[%s425_s5] sm:$0xff]  ;;  %s323_s5 = smov [#allocation2]  }
   0x9   :  { %v295_v24 = vld [vmem:[%s424_s4] ss:$0 sm:$0xff]  ;;  %s210_s8 = sshll.u32 %s323_s5, 4  ;;  %s212_s4 = sshll.u32 %s427_s7, 4  ;;  %s211_s8 = int_to_ptr.vmem [resolvable:$true] %s210_s8  ;;  %s213_s4 = int_to_ptr.hbm [resolvable:$true] %s212_s4 }
   0xa   :  { %135 = vmatpush.bf16.msra.mxu1 %v284_v5  ;;  %v296_v31 = vld [vmem:[%s426_s6] ss:$0 sm:$0xff] }
   0xb   :  { %195 = vmatpush.bf16.msra.mxu2 %v289_v20 }
   0xe   :  { %136 = vmatpush.bf16.msra.mxu1 %v283_v6 }
   0xf   :  { %196 = vmatpush.bf16.msra.mxu2 %v288_v21 }
  0x12   :  { %137 = vmatpush.bf16.msra.mxu1 %v282_v7 }
  0x13   :  { %197 = vmatpush.bf16.msra.mxu2 %v287_v22 }
  0x16   :  { %138 = vmatpush.bf16.msra.mxu1 %v281_v8 }
  0x1a   :  { %139 = vmatpush.bf16.msra.mxu1 %v280_v9 }
  0x1e   :  { %140 = vmatpush.bf16.msra.mxu1 %v279_v10 }
  0x83   :  { %v57_v11 = vpop.f32.mrf.mxu0 }
  0x84   :  { %v58_v13 = vadd.f32 %v294_v12, %v57_v11 }
  0x86   :  { %v62_v16 = vmax.f32 %v58_v13, 0.0 }
  0x8b   :  { %v59_v14 = vpop.f32.mrf.mxu0 }
  0x8c   :  { %v60_v15 = vadd.f32 %v294_v12, %v59_v14 }
  0x8e   :  { %v63_v17 = vmax.f32 %v60_v15, 0.0 }
  0x90   :  { %v64_v18 = vpack.c.bf16 %v63_v17, %v62_v16 }
  0x92   :  { %141 = vmatmul.bf16.vlgmr.msra.gmra.mxu1 %v64_v18 }
 0x10f   :  { %v142_v23 = vpop.f32.mrf.mxu1 }
 0x110   :  { %v143_v25 = vadd.f32 %v295_v24, %v142_v23 }
 0x112   :  { %v147_v28 = vmax.f32 %v143_v25, 0.0 }
 0x117   :  { %v144_v26 = vpop.f32.mrf.mxu1 }
 0x118   :  { %v145_v27 = vadd.f32 %v295_v24, %v144_v26 }
 0x11a   :  { %v148_v29 = vmax.f32 %v145_v27, 0.0 }
 0x11c   :  { %v149_v30 = vpack.c.bf16 %v148_v29, %v147_v28 }
 0x11e   :  { %277 = vmatmul.msk.bf16.vlgmr.msra.gmra.mxu2 %vm186_vm2, %v149_v30 }
 0x1a1   :  { %v199_v32 = vpop.f32.mrf.mxu2 }
 0x1a2   :  { %v200_v33 = vadd.f32 %v296_v31, %v199_v32 }
 0x1a4   :  { %204 = vst [vmem:[#allocation2] sm:$0xff] %v200_v33 }
 0x1a9   :  { %v201_v34 = vpop.f32.mrf.mxu2 }
 0x1aa   :  { %v202_v35 = vadd.f32 %v296_v31, %v201_v34 }
 0x1ac   :  { %205 = vst [vmem:[#allocation2 + $0x8] sm:$0xff] %v202_v35 }
 0x1ad   :  { %218 = dma.vmem_to_hbm [thread:$0]  %s211_s8, 256, %s213_s4, [#allocation3], %s324_s10, %s324_s10, %s325_s11  }
 0x1ae   :  { %321 = dma.done.wait [#allocation3], 256  }
 0x1af   :  { %322 = vsyncadd [#allocation3], 4294967040 }
 0x1b0   :  { %223 = vsyncpa [#allocation3], 1 }

</bundles_post_ra>
